<compile_context>
chip_gen: v7x
topology: tpu7x:2x2x1
jax: 0.10.0
libtpu: 0.0.40
codegen_flags: <defaults>
</compile_context>

<pallas_src>
import functools

import jax
import jax.numpy as jnp
from jax import lax
from jax.experimental import pallas as pl
from jax.experimental.pallas import tpu as pltpu

P_CONTENT = 2.0
WRONG_WEIGHT_PENAL = 3.2
EPS = 1e-10


def _round_up(x, m):
    return (x + m - 1) // m * m


def _pick_tile(size, align, max_tile):
    """Pick (tile, padded_size) with tile % align == 0 and tile | padded_size."""
    padded = _round_up(size, align)
    if padded <= max_tile:
        return padded, padded
    return max_tile, _round_up(size, max_tile)


# ---------------------------------------------------------------------------
# Pallas kernel 1: pairwise DTW distance map (dist_t broadcast over gen x gt)
# ---------------------------------------------------------------------------
def _dist_map_kernel(d, gen_ref, gt_ref, out_ref):
    # gen_ref: (tn, D), gt_ref: (tm, D), out_ref: (tn, tm); batch dim squeezed.
    #
    # dist[n, m] = 2*P_CONTENT * ( -mean_{d<D-1}(gt[m]*log(gen[n]*(1-9e)+e))
    #                              +mean_{d<D-1}(gt[m]*log(gt[m]*(1-9e)+e)) )
    # (the P_end end-frame term is X - X.detach() == 0 in the forward value).
    #
    # MXU formulation: augment gen with [-log(gen_content), 1] and gt with
    # [gt_content, h] (h = per-row entropy sum stored in the unused end lane),
    # then one dot over D yields t1_sum + h directly.
    gen = gen_ref[...]
    gt = gt_ref[...]
    inf = jnp.float32(jnp.inf)
    scale = jnp.float32(2.0 * P_CONTENT / (d - 1))

    # Frame-level validity masks (padded frames are all-inf, as in the module).
    # Note: assumes inf padding is frame-level; per-element inf is not supported.
    gen_inf = jnp.max(jnp.where(gen == inf, 1.0, 0.0), axis=-1, keepdims=True)  # (tn,1)
    gt_inf = jnp.max(jnp.where(gt == inf, 1.0, 0.0), axis=-1, keepdims=True)    # (tm,1)
    gen_m = jnp.where(gen_inf > 0.0, 0.0, gen)
    gt_m = jnp.where(gt_inf > 0.0, 0.0, gt)

    lane_n = lax.broadcasted_iota(jnp.int32, gen_m.shape, 1)
    lane_m = lax.broadcasted_iota(jnp.int32, gt_m.shape, 1)

    log_gen = jnp.log(gen_m * (1.0 - 9.0 * EPS) + EPS)          # (tn, D)
    log_gt = jnp.log(gt_m * (1.0 - 9.0 * EPS) + EPS)            # (tm, D)

    gt_c = jnp.where(lane_m < d - 1, gt_m, 0.0)                 # content lanes only
    h = jnp.sum(gt_c * log_gt, axis=-1, keepdims=True)          # (tm, 1)

    gen_aug = jnp.where(lane_n == d - 1, 1.0, -log_gen)         # (tn, D)
    gt_aug = jnp.where(lane_m == d - 1, h, gt_c)                # (tm, D)

    dn = (((1,), (1,)), ((), ()))                               # contract feature axes
    dist = lax.dot_general(gen_aug, gt_aug, dn,
                           preferred_element_type=jnp.float32)  # (tn, tm)

    # invalid gt rows already give 0 (gt_c == 0, h == 0); mask invalid gen rows.
    gen_valid = 1.0 - gen_inf
    out_ref[...] = scale * gen_valid * dist


def dist_map(gen, gt, max_tn=256, max_tm=256):
    B, N, D = gen.shape
    M = gt.shape[1]
    tn, np_ = _pick_tile(N, 8, max_tn)
    tm, mp_ = _pick_tile(M, 128, max_tm)     # >=128 lanes -> unmasked stores
    gen_p = jnp.pad(gen, ((0, 0), (0, np_ - N), (0, 0)))
    gt_p = jnp.pad(gt, ((0, 0), (0, mp_ - M), (0, 0)))
    out = pl.pallas_call(
        functools.partial(_dist_map_kernel, D),
        out_shape=jax.ShapeDtypeStruct((B, np_, mp_), jnp.float32),
        grid=(B, np_ // tn, mp_ // tm),
        in_specs=[
            pl.BlockSpec((None, tn, D), lambda b, ni, mi: (b, ni, 0)),
            pl.BlockSpec((None, tm, D), lambda b, ni, mi: (b, mi, 0)),
        ],
        out_specs=pl.BlockSpec((None, tn, tm), lambda b, ni, mi: (b, ni, mi)),
        compiler_params=pltpu.CompilerParams(
            dimension_semantics=("parallel", "parallel", "parallel")),
    )(gen_p, gt_p)
    return out[:, :N, :M]


# ---------------------------------------------------------------------------
# Pallas kernel 2: training (second-phase) per-frame loss, reduced over features
# ---------------------------------------------------------------------------
def _train_loss_kernel(p_end, d, gen_ref, gtr_ref, out_ref):
    # gen_ref/gtr_ref: (tn, D); out_ref: (1, tn) (lane-dense row of losses).
    gen = gen_ref[...]
    gtr = gtr_ref[...]
    lane = lax.broadcasted_iota(jnp.int32, gen.shape, 1)
    log_gen = jnp.log(gen * (1.0 - 9.0 * EPS) + EPS)
    log_gtr = jnp.log(gtr * (1.0 - 9.0 * EPS) + EPS)
    # content cross-entropy + (negative) entropy; end lane masked out of the sum
    body = jnp.where(lane < d - 1, gtr * (log_gtr - log_gen), 0.0)       # (tn, D)

    ones_row = jnp.full((1, gen.shape[1]), 1.0, jnp.float32)
    last_row = jnp.where(
        lax.broadcasted_iota(jnp.int32, (1, gen.shape[1]), 1) == d - 1, 1.0, 0.0)
    dn = (((1,), (1,)), ((), ()))
    t12 = lax.dot_general(ones_row, body, dn,
                          preferred_element_type=jnp.float32)            # (1, tn)
    ge = lax.dot_general(last_row, gen, dn, preferred_element_type=jnp.float32)
    re = lax.dot_general(last_row, gtr, dn, preferred_element_type=jnp.float32)
    end_term = -(re * jnp.log(ge * (1.0 - 2.0 * EPS) + EPS)
                 + (1.0 - re) * jnp.log((1.0 - ge) * (1.0 - 2.0 * EPS) + EPS))
    out_ref[...] = (2.0 * P_CONTENT / (d - 1)) * t12 + p_end * end_term


def train_phase2_loss(gen, gt_rec, p_end, max_tn=512):
    B, N, D = gen.shape
    tn, np_ = _pick_tile(N, 128, max_tn)     # lane-dense output blocks
    gen_p = jnp.pad(gen, ((0, 0), (0, np_ - N), (0, 0)))
    gtr_p = jnp.pad(gt_rec, ((0, 0), (0, np_ - N), (0, 0)))
    out = pl.pallas_call(
        functools.partial(_train_loss_kernel, float(p_end), D),
        out_shape=jax.ShapeDtypeStruct((B, 1, np_), jnp.float32),
        grid=(B, np_ // tn),
        in_specs=[
            pl.BlockSpec((None, tn, D), lambda b, n: (b, n, 0)),
            pl.BlockSpec((None, tn, D), lambda b, n: (b, n, 0)),
        ],
        out_specs=pl.BlockSpec((None, 1, tn), lambda b, n: (b, 0, n)),
        compiler_params=pltpu.CompilerParams(
            dimension_semantics=("parallel", "parallel")),
    )(gen_p, gtr_p)
    return out[:, 0, :N]


# ---------------------------------------------------------------------------
# Forward, branch: if_training=True, if_firstphase=False
# ---------------------------------------------------------------------------
def sdtwvl_training_phase2(gen, gt, endframenum, framelen, path, P_end=0.2):
    del framelen  # unused in this branch (as in the PyTorch code)
    B, N, D = gen.shape
    gt_rec = jnp.take_along_axis(
        gt, jnp.broadcast_to(path[:, :, None], (B, path.shape[1], D)), axis=1)
    loss = train_phase2_loss(gen, gt_rec, P_end)                     # (B, N) Pallas
    cum = jnp.cumsum(loss, axis=1)
    ans = jnp.take_along_axis(cum, (endframenum - 1)[:, None], axis=1)   # (B, 1)
    return ans, endframenum - 1, jnp.zeros((B,), jnp.float32)


# ---------------------------------------------------------------------------
# Forward, branch: if_training=False, if_firstphase=False, requires_path=False
# (DTW dynamic program; distance map comes from the Pallas kernel, DP is a scan)
# ---------------------------------------------------------------------------
def sdtwvl_eval(gen, gt, endframenum, framelen, v_lambda=0.01, P_end=0.2):
    del P_end  # P_end terms cancel in the forward value (X - X.detach())
    B, N, D = gen.shape
    M = gt.shape[1]
    inf = jnp.float32(jnp.inf)

    dist = dist_map(gen, gt)                                         # (B, N, M) Pallas
    mds = jnp.zeros((B, N + 3, M + 3), jnp.float32).at[:, 1:-2, 1:-2].set(dist)

    col3 = jnp.arange(M + 3)
    fpl = jnp.where(col3[None, :] == framelen[:, None], inf, 0.0)    # (B, M+3)
    fpl2 = jnp.where(col3[None, :] == (framelen - 1)[:, None], inf, 0.0)
    fpl_c = fpl[:, :-2]        # (B, M+1)
    fpl2_c = fpl2[:, :-2]      # (B, M+1)
    fpl_mid = fpl[:, 1:-2]     # (B, M)

    r = jnp.arange(M + 1)
    ri, ci = r[:, None], r[None, :]
    del_penalty = v_lambda * jnp.maximum(ci - ri, 0).astype(jnp.float32)
    ignore_tril = jnp.where(ci < ri, inf, 0.0)
    upper_strict = (ci >= ri + 1)[None]                              # (1, M+1, M+1)

    a_prev0 = jnp.full((B, M + 1), 1e20, jnp.float32).at[:, 0].set(0.0)
    drm_prev0 = jnp.broadcast_to(r.astype(jnp.float32)[None, :], (B, M + 1))

    xs = (
        jnp.swapaxes(mds[:, 0:N], 0, 1),         # row i-1   (N, B, M+3)
        jnp.swapaxes(mds[:, 1:N + 1], 0, 1),     # row i
        jnp.swapaxes(mds[:, 2:N + 2], 0, 1),     # row i+1
        jnp.arange(1, N + 1, dtype=jnp.float32),
    )

    def step(carry, x):
        a_prev, drm_prev = carry
        m_im1, m_i, m_ip1, i_f = x
        min5 = jnp.minimum(
            m_ip1[:, 2:-1],
            jnp.minimum(m_im1[:, 0:-3],
                        jnp.minimum(jnp.minimum(m_i[:, 1:-2], m_i[:, 0:-3]),
                                    m_im1[:, 1:-2])))
        match_tensor = a_prev[:, :-1] + m_i[:, 1:-2] + min5
        del_tensor_prev = a_prev[:, 1:] + (m_i[:, 1:-2] + fpl_mid) + v_lambda
        fdg = jnp.where(del_tensor_prev <= match_tensor, 0.0, 1.0)   # ties -> delete
        a_prev_cat = jnp.where(fdg == 0.0, del_tensor_prev, match_tensor)
        a_before_delgt = jnp.concatenate(
            [jnp.full((B, 1), 1e20, jnp.float32), a_prev_cat], axis=1)   # (B, M+1)

        new_dr = (1.0 - fdg) * (drm_prev[:, 1:] + 1.0) + fdg * drm_prev[:, :-1]
        drm_row = jnp.concatenate(
            [jnp.broadcast_to(i_f, (B, 1)), new_dr], axis=1)             # (B, M+1)

        base = m_i[:, :-2] + fpl_c + fpl2_c                              # (B, M+1)
        tri = jnp.where(upper_strict, base[:, None, :], 0.0)             # (B,M+1,M+1)
        cs = jnp.cumsum(tri, axis=2)
        src = (a_before_delgt[:, :, None] + ignore_tril[None]
               + del_penalty[None] + cs)
        k = jnp.argmin(src, axis=1)                                      # (B, M+1)
        a_row = jnp.min(src, axis=1)
        drm_new = (jnp.take_along_axis(drm_row, k, axis=1)
                   + (r[None, :] - k).astype(jnp.float32))
        return (a_row, drm_new), (a_row, drm_new)

    _, (a_rows, drm_rows) = lax.scan(step, (a_prev0, drm_prev0), xs)
    a2 = jnp.swapaxes(a_rows, 0, 1)[:, :, 1:]        # (B, N, M)  == a[:, 1:-1, 1:]
    drm2 = jnp.swapaxes(drm_rows, 0, 1)[:, :, 1:]    # (B, N, M)

    frameindex = framelen - 1
    idx = jnp.broadcast_to(frameindex[:, None, None], (B, N, 1))
    kvals = jnp.take_along_axis(a2, idx, axis=2)[..., 0]                 # (B, N)
    endframenum2 = endframenum - 1
    ans = jnp.take_along_axis(kvals, endframenum2[:, None], axis=1)[:, 0]
    allnum = framelen + endframenum2
    drm_k = jnp.take_along_axis(drm2, idx, axis=2)[..., 0]
    drm3 = jnp.take_along_axis(drm_k, endframenum2[:, None], axis=1)[:, 0]
    del_ratio = drm3 * 1.0 / allnum
    goodendpos = endframenum2     # (not if_firstphase) -> overwritten, as in PyTorch
    return ans, goodendpos, del_ratio


if __name__ == "__main__":
    key = jax.random.PRNGKey(0)
    B, N, M, D = 2, 8, 8, 16
    k1, k2, k3, k4, k5 = jax.random.split(key, 5)

    gen_content = jax.nn.softmax(jax.random.normal(k1, (B, N, D - 1)), axis=-1)
    gen_end = jax.nn.sigmoid(jax.random.normal(k2, (B, N, 1)))
    gen = jnp.concatenate([gen_content, gen_end], axis=-1).astype(jnp.float32)

    gt_content = jax.nn.softmax(jax.random.normal(k3, (B, M, D - 1)), axis=-1)
    gt_end = jax.nn.sigmoid(jax.random.normal(k4, (B, M, 1)))
    gt = jnp.concatenate([gt_content, gt_end], axis=-1).astype(jnp.float32)

    endframenum = jnp.array([5, 7], dtype=jnp.int32)   # 1-based end frame in gen
    framelen = jnp.array([6, 8], dtype=jnp.int32)      # gt frame lengths
    path = jax.random.randint(k5, (B, N), 0, M, dtype=jnp.int32)

    # Branch A: evaluation / DTW DP (if_training=False)
    ans_eval, goodendpos, del_ratio = jax.jit(sdtwvl_eval)(gen, gt, endframenum, framelen)
    jax.block_until_ready((ans_eval, goodendpos, del_ratio))

    # Branch B: training second phase (if_training=True, if_firstphase=False)
    ans_tr, endidx, zeros_b = jax.jit(sdtwvl_training_phase2)(
        gen, gt, endframenum, framelen, path)
    jax.block_until_ready((ans_tr, endidx, zeros_b))

    print("KERNEL_OK")
</pallas_src>

<mosaic_0001>
module attributes {stable_mosaic.version = 11 : i64} {
  func.func @_dist_map_kernel(%arg0: i32, %arg1: i32, %arg2: i32, %arg3: memref<1x8x16xf32, #tpu.memory_space<vmem>>, %arg4: memref<1x128x16xf32, #tpu.memory_space<vmem>>, %arg5: memref<1x8x128xf32, #tpu.memory_space<vmem>>) attributes {dimension_semantics = [#tpu.dimension_semantics<parallel>, #tpu.dimension_semantics<parallel>, #tpu.dimension_semantics<parallel>], iteration_bounds = array<i64: 2, 1, 1>, scalar_prefetch = 0 : i64, scratch_operands = 0 : i64, tpu.core_type = #tpu.core_type<tc>, window_params = [{transform_indices = @transform_0, window_bounds = array<i64: 1, 8, 16>}, {transform_indices = @transform_1, window_bounds = array<i64: 1, 128, 16>}, {transform_indices = @transform_2, window_bounds = array<i64: 1, 8, 128>}]} {
    %c0 = arith.constant 0 : index
    %c0_0 = arith.constant 0 : index
    %c0_1 = arith.constant 0 : index
    %0 = vector.load %arg3[%c0, %c0_0, %c0_1] : memref<1x8x16xf32, #tpu.memory_space<vmem>>, vector<1x8x16xf32>
    %1 = vector.shape_cast %0 : vector<1x8x16xf32> to vector<8x16xf32>
    %c0_2 = arith.constant 0 : index
    %c0_3 = arith.constant 0 : index
    %c0_4 = arith.constant 0 : index
    %2 = vector.load %arg4[%c0_2, %c0_3, %c0_4] : memref<1x128x16xf32, #tpu.memory_space<vmem>>, vector<1x128x16xf32>
    %3 = vector.shape_cast %2 : vector<1x128x16xf32> to vector<128x16xf32>
    %cst = arith.constant 0x7F800000 : f32
    %4 = vector.broadcast %cst : f32 to vector<8x16xf32>
    %5 = arith.cmpf oeq, %1, %4 : vector<8x16xf32>
    %cst_5 = arith.constant 1.000000e+00 : f32
    %cst_6 = arith.constant 0.000000e+00 : f32
    %6 = vector.broadcast %cst_5 : f32 to vector<8x16xf32>
    %7 = vector.broadcast %cst_6 : f32 to vector<8x16xf32>
    %8 = arith.select %5, %6, %7 : vector<8x16xi1>, vector<8x16xf32>
    %cst_7 = arith.constant dense<0xFF800000> : vector<8xf32>
    %9 = vector.multi_reduction <maximumf>, %8, %cst_7 [1] : vector<8x16xf32> to vector<8xf32>
    %10 = vector.shape_cast %9 : vector<8xf32> to vector<8x1xf32>
    %cst_8 = arith.constant 0x7F800000 : f32
    %11 = vector.broadcast %cst_8 : f32 to vector<128x16xf32>
    %12 = arith.cmpf oeq, %3, %11 : vector<128x16xf32>
    %cst_9 = arith.constant 1.000000e+00 : f32
    %cst_10 = arith.constant 0.000000e+00 : f32
    %13 = vector.broadcast %cst_9 : f32 to vector<128x16xf32>
    %14 = vector.broadcast %cst_10 : f32 to vector<128x16xf32>
    %15 = arith.select %12, %13, %14 : vector<128x16xi1>, vector<128x16xf32>
    %cst_11 = arith.constant dense<0xFF800000> : vector<128xf32>
    %16 = vector.multi_reduction <maximumf>, %15, %cst_11 [1] : vector<128x16xf32> to vector<128xf32>
    %17 = vector.shape_cast %16 : vector<128xf32> to vector<128x1xf32>
    %cst_12 = arith.constant 0.000000e+00 : f32
    %18 = vector.broadcast %cst_12 : f32 to vector<8x1xf32>
    %19 = arith.cmpf ogt, %10, %18 : vector<8x1xf32>
    %cst_13 = arith.constant 0.000000e+00 : f32
    %20 = vector.shape_cast %19 : vector<8x1xi1> to vector<8x1xi1>
    %21 = vector.broadcast %20 : vector<8x1xi1> to vector<8x16xi1>
    %22 = vector.broadcast %cst_13 : f32 to vector<8x16xf32>
    %23 = arith.select %21, %22, %1 : vector<8x16xi1>, vector<8x16xf32>
    %cst_14 = arith.constant 0.000000e+00 : f32
    %24 = vector.broadcast %cst_14 : f32 to vector<128x1xf32>
    %25 = arith.cmpf ogt, %17, %24 : vector<128x1xf32>
    %cst_15 = arith.constant 0.000000e+00 : f32
    %26 = vector.shape_cast %25 : vector<128x1xi1> to vector<128x1xi1>
    %27 = vector.broadcast %26 : vector<128x1xi1> to vector<128x16xi1>
    %28 = vector.broadcast %cst_15 : f32 to vector<128x16xf32>
    %29 = arith.select %27, %28, %3 : vector<128x16xi1>, vector<128x16xf32>
    %30 = tpu.iota {dimensions = array<i32: 1>} : vector<8x16xi32>
    %31 = tpu.iota {dimensions = array<i32: 1>} : vector<128x16xi32>
    %cst_16 = arith.constant 1.000000e+00 : f32
    %32 = vector.broadcast %cst_16 : f32 to vector<8x16xf32>
    %33 = arith.mulf %23, %32 : vector<8x16xf32>
    %cst_17 = arith.constant 1.000000e-10 : f32
    %34 = vector.broadcast %cst_17 : f32 to vector<8x16xf32>
    %35 = arith.addf %33, %34 : vector<8x16xf32>
    %36 = math.log %35 : vector<8x16xf32>
    %cst_18 = arith.constant 1.000000e+00 : f32
    %37 = vector.broadcast %cst_18 : f32 to vector<128x16xf32>
    %38 = arith.mulf %29, %37 : vector<128x16xf32>
    %cst_19 = arith.constant 1.000000e-10 : f32
    %39 = vector.broadcast %cst_19 : f32 to vector<128x16xf32>
    %40 = arith.addf %38, %39 : vector<128x16xf32>
    %41 = math.log %40 : vector<128x16xf32>
    %c15_i32 = arith.constant 15 : i32
    %42 = vector.broadcast %c15_i32 : i32 to vector<128x16xi32>
    %43 = arith.cmpi slt, %31, %42 : vector<128x16xi32>
    %cst_20 = arith.constant 0.000000e+00 : f32
    %44 = vector.broadcast %cst_20 : f32 to vector<128x16xf32>
    %45 = arith.select %43, %29, %44 : vector<128x16xi1>, vector<128x16xf32>
    %46 = arith.mulf %45, %41 : vector<128x16xf32>
    %cst_21 = arith.constant dense<0.000000e+00> : vector<128xf32>
    %47 = vector.multi_reduction <add>, %46, %cst_21 [1] : vector<128x16xf32> to vector<128xf32>
    %48 = vector.shape_cast %47 : vector<128xf32> to vector<128x1xf32>
    %c15_i32_22 = arith.constant 15 : i32
    %49 = vector.broadcast %c15_i32_22 : i32 to vector<8x16xi32>
    %50 = arith.cmpi eq, %30, %49 : vector<8x16xi32>
    %cst_23 = arith.constant 0.000000e+00 : f32
    %51 = vector.broadcast %cst_23 : f32 to vector<8x16xf32>
    %52 = arith.subf %51, %36 : vector<8x16xf32>
    %cst_24 = arith.constant 1.000000e+00 : f32
    %53 = vector.broadcast %cst_24 : f32 to vector<8x16xf32>
    %54 = arith.select %50, %53, %52 : vector<8x16xi1>, vector<8x16xf32>
    %c15_i32_25 = arith.constant 15 : i32
    %55 = vector.broadcast %c15_i32_25 : i32 to vector<128x16xi32>
    %56 = arith.cmpi eq, %31, %55 : vector<128x16xi32>
    %57 = vector.shape_cast %48 : vector<128x1xf32> to vector<128x1xf32>
    %58 = vector.broadcast %57 : vector<128x1xf32> to vector<128x16xf32>
    %59 = arith.select %56, %58, %45 : vector<128x16xi1>, vector<128x16xf32>
    %cst_26 = arith.constant dense<0.000000e+00> : vector<8x128xf32>
    %60 = tpu.matmul %54, %59, %cst_26 {dimension_numbers = #tpu.dot_dimension_numbers<[1], [1], [0], [0], [0, 0, 1, 0], [], []>} : vector<8x16xf32>, vector<128x16xf32>, vector<8x128xf32> -> vector<8x128xf32>
    %cst_27 = arith.constant 1.000000e+00 : f32
    %61 = vector.broadcast %cst_27 : f32 to vector<8x1xf32>
    %62 = arith.subf %61, %10 : vector<8x1xf32>
    %cst_28 = arith.constant 0.266666681 : f32
    %63 = vector.broadcast %cst_28 : f32 to vector<8x1xf32>
    %64 = arith.mulf %63, %62 : vector<8x1xf32>
    %65 = vector.broadcast %64 : vector<8x1xf32> to vector<8x128xf32>
    %66 = arith.mulf %65, %60 : vector<8x128xf32>
    %c0_29 = arith.constant 0 : index
    %c0_30 = arith.constant 0 : index
    %c0_31 = arith.constant 0 : index
    %67 = vector.load %arg5[%c0_29, %c0_30, %c0_31] : memref<1x8x128xf32, #tpu.memory_space<vmem>>, vector<1x8x128xf32>
    %68 = vector.shape_cast %67 : vector<1x8x128xf32> to vector<8x128xf32>
    %69 = vector.shape_cast %66 : vector<8x128xf32> to vector<1x8x128xf32>
    tpu.vector_store %arg5[%c0_29, %c0_30, %c0_31], %69 {strides = array<i32>} : memref<1x8x128xf32, #tpu.memory_space<vmem>>, vector<1x8x128xf32>,
    return
  }
  func.func @transform_0(%arg0: i32, %arg1: i32, %arg2: i32) -> (i32, i32, i32) {
    %c0_i32 = arith.constant 0 : i32
    %c0_i32_0 = arith.constant 0 : i32
    return %arg0, %arg1, %c0_i32 : i32, i32, i32
  }
  func.func @transform_1(%arg0: i32, %arg1: i32, %arg2: i32) -> (i32, i32, i32) {
    %c0_i32 = arith.constant 0 : i32
    %c0_i32_0 = arith.constant 0 : i32
    return %arg0, %arg2, %c0_i32 : i32, i32, i32
  }
  func.func @transform_2(%arg0: i32, %arg1: i32, %arg2: i32) -> (i32, i32, i32) {
    %c0_i32 = arith.constant 0 : i32
    return %arg0, %arg1, %arg2 : i32, i32, i32
  }
}

</mosaic_0001>

<bundles_post_ra>
// kernel: custom-call.15
= control target key start
LH: loop header
LB: loop body
LE: loop exit
PB: predicated region body
PF: predicated region fallthrough
CT: control target
= control target key end

     0   :  { %s6_s0 = inlined_call_operand.vmem [shape: f32[8,2,9], index: 0, kind: output, shape index: {}]  }

// kernel: sdtwvl_eval.1
= control target key start
LH: loop header
LB: loop body
LE: loop exit
PB: predicated region body
PF: predicated region fallthrough
CT: control target
= control target key end

     0   :  { %s991_s9 = smov 0   ;;  %s993_s10 = smov 0   ;;  %s1369_s0 = inlined_call_operand.vmem [shape: f32[2,8,16], index: 0, kind: input, shape index: {}]   ;;  %s1370_s1 = inlined_call_operand.vmem [shape: f32[2,128,16], index: 1, kind: input, shape index: {}]   ;;  %s1371_s2 = inlined_call_operand.vmem [shape: f32[2,8,128], index: 2, kind: output, shape index: {}]  }
   0x1   :  { %s995_s11 = smov 0  }
   0x2 LB: > { %s31_s12 = sadd.s32 1, %s967_s10  ;;  %p779_p0 = scmp.ge.s32.totalorder %s971_s11, 1  ;;  %s971_s11 = sphi %s995_s11, %s12_s11   ;;  %s967_s10 = sphi %s993_s10, %s1375_s10   ;;  %s963_s9 = sphi %s991_s9, %s1374_s9  }
   0x3   : > { %p33_p1 = scmp.ge.s32.totalorder %s31_s12, 2  ;;  %p156_p2 = scmp.lt.s32.totalorder %s971_s11, 3 }
   0x5   : > { %s1377_s12 = smov (%p33_p1, %s31_s12), 0  ;;  %p157_p3 = pnand %p779_p0, %p156_p2 }
   0x6   : > { %p194_p4 = scmp.lt.s32.totalorder (!%p157_p3), %s963_s9, 1  ;;  %vm240_vm0 = vcmask (!%p157_p3), 130048   ;;  %v973_v6 = vmov (!%p157_p3), 0.0   ;;  %v392_v61 = vlaneseq (!%p157_p3) }
   0x7   : > { %160 = sbr.rel (%p157_p3) target bundleno = 611 (0x263), region = 28 }
   0xe   : > { %s1379_s9 = smov (!%p194_p4, %s963_s9), 1 }
   0xf   : > { %s803_s13 = sshll.u32 %s1379_s9, 7  ;;  %s780_s17 = sshll.u32 %s1379_s9, 3 }
  0x10   : > { %s1015_s16 = scalar_lea.vmem %s1370_s1, %s803_s13  ;;  %s200_s20 = scalar_lea.vmem %s1369_s0, %s780_s17 }
  0x11   : > { %v1018_v0 = vld [vmem:[%s1015_s16 + $0x10] sm:$0xff]  ;;  %v1021_v1 = vld [vmem:[%s1015_s16] sm:$0xff]  ;;  %v1024_v2 = vld [vmem:[%s1015_s16 + $0x18] sm:$0xff]  ;;  %s220_s23 = scalar_lea.vmem %s1371_s2, %s780_s17 }
  0x12   : > { %vm246_vm1 = vcmp.eq.f32.partialorder %v1018_v0, inf  ;;  %vm244_vm2 = vcmp.eq.f32.partialorder %v1021_v1, inf  ;;  %vm247_vm3 = vcmp.eq.f32.partialorder %v1024_v2, inf  ;;  %v1030_v3 = vld [vmem:[%s1015_s16 + $0x8] sm:$0xff]  ;;  %v1036_v5 = vld [vmem:[%s1015_s16 + $0x20] sm:$0xff]  ;;  %v1048_v13 = vld [vmem:[%s1015_s16 + $0x30] sm:$0xff] }
  0x13   : > { %v1033_v4 = vld [vmem:[%s1015_s16 + $0x28] sm:$0xff]  ;;  %v262_v7 = vsel %vm246_vm1, 1.0, %v973_v6  ;;  %v260_v8 = vsel %vm244_vm2, 1.0, %v973_v6  ;;  %v263_v9 = vsel %vm247_vm3, 1.0, %v973_v6  ;;  %vm245_vm4 = vcmp.eq.f32.partialorder %v1030_v3, inf  ;;  %v1051_v14 = vld [vmem:[%s1015_s16 + $0x38] sm:$0xff] }
  0x14   : > { %v282_v10 = vsel %vm240_vm0, %v262_v7, -inf  ;;  %v276_v11 = vsel %vm240_vm0, %v260_v8, -inf  ;;  %v261_v12 = vsel %vm245_vm4, 1.0, %v973_v6  ;;  %vm249_vm5 = vcmp.eq.f32.partialorder %v1033_v4, inf  ;;  %v1060_v19 = vld [vmem:[%s1015_s16 + $0x40] sm:$0xff]  ;;  %v1063_v20 = vld [vmem:[%s1015_s16 + $0x48] sm:$0xff] }
  0x15   : > { %283 = vmax.xlane.f32.xlu1 %v282_v10  ;;  %277 = vmax.xlane.f32.xlu0 %v276_v11  ;;  %vm248_vm6 = vcmp.eq.f32.partialorder %v1036_v5, inf  ;;  %v285_v15 = vsel %vm240_vm0, %v263_v9, -inf  ;;  %v279_v16 = vsel %vm240_vm0, %v261_v12, -inf  ;;  %v265_v17 = vsel %vm249_vm5, 1.0, %v973_v6  ;;  %v1072_v25 = vld [vmem:[%s1015_s16 + $0x50] sm:$0xff]  ;;  %v1075_v26 = vld [vmem:[%s1015_s16 + $0x58] sm:$0xff] }
  0x16   : > { %v264_v18 = vsel %vm248_vm6, 1.0, %v973_v6  ;;  %vm250_vm7 = vcmp.eq.f32.partialorder %v1048_v13, inf  ;;  %vm251_vm8 = vcmp.eq.f32.partialorder %v1051_v14, inf  ;;  %v291_v21 = vsel %vm240_vm0, %v265_v17, -inf  ;;  %v1084_v31 = vld [vmem:[%s1015_s16 + $0x68] sm:$0xff]  ;;  %v1087_v32 = vld [vmem:[%s1015_s16 + $0x60] sm:$0xff] }
  0x17   : > { %v288_v22 = vsel %vm240_vm0, %v264_v18, -inf  ;;  %v266_v23 = vsel %vm250_vm7, 1.0, %v973_v6  ;;  %v267_v24 = vsel %vm251_vm8, 1.0, %v973_v6  ;;  %vm252_vm9 = vcmp.eq.f32.partialorder %v1060_v19, inf  ;;  %v1096_v37 = vld [vmem:[%s1015_s16 + $0x78] sm:$0xff]  ;;  %v1099_v38 = vld [vmem:[%s1015_s16 + $0x70] sm:$0xff] }
  0x18   : > { %vm253_vm10 = vcmp.eq.f32.partialorder %v1063_v20, inf  ;;  %v294_v27 = vsel %vm240_vm0, %v266_v23, -inf  ;;  %v297_v28 = vsel %vm240_vm0, %v267_v24, -inf  ;;  %v268_v29 = vsel %vm252_vm9, 1.0, %v973_v6 }
  0x19   : > { %286 = vmax.xlane.f32.xlu1 %v285_v15  ;;  %280 = vmax.xlane.f32.xlu0 %v279_v16  ;;  %v269_v30 = vsel %vm253_vm10, 1.0, %v973_v6  ;;  %vm254_vm11 = vcmp.eq.f32.partialorder %v1072_v25, inf  ;;  %vm255_vm12 = vcmp.eq.f32.partialorder %v1075_v26, inf  ;;  %v300_v33 = vsel %vm240_vm0, %v268_v29, -inf }
  0x1a   : > { %v303_v34 = vsel %vm240_vm0, %v269_v30, -inf  ;;  %v270_v35 = vsel %vm254_vm11, 1.0, %v973_v6  ;;  %v271_v36 = vsel %vm255_vm12, 1.0, %v973_v6  ;;  %vm257_vm13 = vcmp.eq.f32.partialorder %v1084_v31, inf }
  0x1b   : > { %vm256_vm14 = vcmp.eq.f32.partialorder %v1087_v32, inf  ;;  %v306_v39 = vsel %vm240_vm0, %v270_v35, -inf  ;;  %v309_v40 = vsel %vm240_vm0, %v271_v36, -inf  ;;  %v273_v41 = vsel %vm257_vm13, 1.0, %v973_v6 }
  0x1c   : > { %v272_v42 = vsel %vm256_vm14, 1.0, %v973_v6  ;;  %vm259_vm15 = vcmp.eq.f32.partialorder %v1096_v37, inf  ;;  %vm258_vm1 = vcmp.eq.f32.partialorder %v1099_v38, inf  ;;  %v315_v43 = vsel %vm240_vm0, %v273_v41, -inf }
  0x1d   : > { %292 = vmax.xlane.f32.xlu1 %v291_v21  ;;  %289 = vmax.xlane.f32.xlu0 %v288_v22  ;;  %v312_v44 = vsel %vm240_vm0, %v272_v42, -inf  ;;  %v275_v45 = vsel %vm259_vm15, 1.0, %v973_v6  ;;  %v274_v46 = vsel %vm258_vm1, 1.0, %v973_v6 }
  0x1e   : > { %v321_v47 = vsel %vm240_vm0, %v275_v45, -inf  ;;  %v318_v48 = vsel %vm240_vm0, %v274_v46, -inf }
  0x21   : > { %295 = vmax.xlane.f32.xlu0 %v294_v27  ;;  %298 = vmax.xlane.f32.xlu1 %v297_v28 }
  0x25   : > { %301 = vmax.xlane.f32.xlu0 %v300_v33  ;;  %304 = vmax.xlane.f32.xlu1 %v303_v34 }
  0x29   : > { %307 = vmax.xlane.f32.xlu0 %v306_v39  ;;  %310 = vmax.xlane.f32.xlu1 %v309_v40 }
  0x2d   : > { %316 = vmax.xlane.f32.xlu1 %v315_v43  ;;  %313 = vmax.xlane.f32.xlu0 %v312_v44 }
  0x31   : > { %322 = vmax.xlane.f32.xlu1 %v321_v47  ;;  %319 = vmax.xlane.f32.xlu0 %v318_v48 }
  0xa2   : > { %v284_v49 = vpop.xlane.xlu1 %283  ;;  %v278_v50 = vpop.xlane.xlu0 %277 }
  0xa3   : > { %vm330_vm2 = vcmp.gt.f32.partialorder %v284_v49, 0.0  ;;  %vm328_vm3 = vcmp.gt.f32.partialorder %v278_v50, 0.0 }
  0xa4   : > { %v378_v51 = vsel %vm330_vm2, 0.0, %v1018_v0  ;;  %v376_v52 = vsel %vm328_vm3, 0.0, %v1021_v1 }
  0xa5   : > { %v399_v53 = vadd.f32 1e-10, %v378_v51  ;;  %v397_v54 = vadd.f32 1e-10, %v376_v52 }
  0xa6   : > { %v287_v55 = vpop.xlane.xlu1 %286  ;;  %v281_v56 = vpop.xlane.xlu0 %280 }
  0xa7   : > { %915 = vlog2.f32 %v399_v53  ;;  %vm331_vm4 = vcmp.gt.f32.partialorder %v287_v55, 0.0  ;;  %vm329_vm5 = vcmp.gt.f32.partialorder %v281_v56, 0.0 }
  0xa8   : > { %917 = vlog2.f32 %v397_v54  ;;  %v379_v57 = vsel %vm331_vm4, 0.0, %v1024_v2  ;;  %v377_v58 = vsel %vm329_vm5, 0.0, %v1030_v3  ;;  %v1122_v2 = vand.u32 127, %v392_v61 }
  0xa9   : > { %v400_v59 = vadd.f32 1e-10, %v379_v57  ;;  %v398_v60 = vadd.f32 1e-10, %v377_v58  ;;  %vm975_vm5 = vmmov 0  }
  0xaa   : > { %v293_v62 = vpop.xlane.xlu1 %292  ;;  %v290_v63 = vpop.xlane.xlu0 %289  ;;  %vm445_vm10 = vcmp.lt.s32.totalorder %v1122_v2, 15  ;;  %853 = vmatprep.mubr.msk.f32.mxu0 %vm975_vm5, %v973_v6 }
  0xab   : > { %919 = vlog2.f32 %v400_v59  ;;  %vm333_vm6 = vcmp.gt.f32.partialorder %v293_v62, 0.0  ;;  %vm332_vm7 = vcmp.gt.f32.partialorder %v290_v63, 0.0  ;;  %v1138_v23 = vsel %vm445_vm10, %v378_v51, 0.0 }
  0xac   : > { %921 = vlog2.f32 %v398_v60  ;;  %v381_v0 = vsel %vm333_vm6, 0.0, %v1033_v4  ;;  %v1119_v1 = vsel %vm332_vm7, 0.0, %v1036_v5  ;;  %v1142_v24 = vsel %vm445_vm10, %v376_v52, 0.0  ;;  %vm1282_vm7 = vmpackc.low %vm240_vm0, %vm240_vm0 }
  0xad   : > { %v402_v7 = vadd.f32 1e-10, %v381_v0  ;;  %v401_v8 = vadd.f32 1e-10, %v1119_v1  ;;  %v1161_v43 = vsel %vm445_vm10, %v377_v58, 0.0  ;;  %v1165_v44 = vsel %vm445_vm10, %v381_v0, 0.0 }
  0xae   : > { %v296_v3 = vpop.xlane.xlu0 %295  ;;  %v299_v9 = vpop.xlane.xlu1 %298  ;;  %vm526_vm6 = vcmp.eq.s32.totalorder %v1122_v2, 15 }
  0xaf   : > { %923 = vlog2.f32 %v402_v7  ;;  %vm334_vm8 = vcmp.gt.f32.partialorder %v296_v3, 0.0  ;;  %vm335_vm9 = vcmp.gt.f32.partialorder %v299_v9, 0.0 }
  0xb0   : > { %925 = vlog2.f32 %v401_v8  ;;  %v382_v10 = vsel %vm334_vm8, 0.0, %v1048_v13  ;;  %v1126_v11 = vsel %vm335_vm9, 0.0, %v1051_v14 }
  0xb1   : > { %v916_v4 = vpop.eup %915  ;;  %v403_v12 = vadd.f32 1e-10, %v382_v10  ;;  %v404_v5 = vadd.f32 1e-10, %v1126_v11  ;;  %v1187_v58 = vsel %vm445_vm10, %v382_v10, 0.0 }
  0xb2   : > { %v918_v15 = vpop.eup %917  ;;  %v302_v16 = vpop.xlane.xlu0 %301  ;;  %v418_v18 = vmul.f32 0.6931472, %v916_v4  ;;  %v1205_v4 = vsel %vm445_vm10, %v1126_v11, 0.0 }
  0xb3   : > { %v305_v17 = vpop.xlane.xlu1 %304  ;;  %927 = vlog2.f32 %v403_v12  ;;  %vm336_vm11 = vcmp.gt.f32.partialorder %v302_v16, 0.0  ;;  %v414_v21 = vmul.f32 0.6931472, %v918_v15 }
  0xb4   : > { %vm337_vm12 = vcmp.gt.f32.partialorder %v305_v17, 0.0  ;;  %929 = vlog2.f32 %v404_v5  ;;  %v1131_v13 = vsel %vm336_vm11, 0.0, %v1060_v19  ;;  %v1148_v19 = vsel %vm445_vm10, %v379_v57, 0.0 }
  0xb5   : > { %v1134_v14 = vsel %vm337_vm12, 0.0, %v1063_v20  ;;  %v920_v22 = vpop.eup %919  ;;  %v405_v27 = vadd.f32 1e-10, %v1131_v13  ;;  %v462_v30 = vmul.f32 %v1142_v24, %v414_v21  ;;  %v464_v34 = vmul.f32 %v1138_v23, %v418_v18  ;;  %v1219_v21 = vld [vmem:[%s200_s20] sm:$0xff] }
  0xb6   : > { %v406_v28 = vadd.f32 1e-10, %v1134_v14  ;;  %v922_v29 = vpop.eup %921  ;;  %v308_v20 = vpop.xlane.xlu0 %307  ;;  %v420_v35 = vmul.f32 0.6931472, %v920_v22  ;;  %v1183_v57 = vsel %vm445_vm10, %v1119_v1, 0.0  ;;  %v1210_v12 = vsel %vm445_vm10, %v1131_v13, 0.0 }
  0xb7   : > { %v311_v33 = vpop.xlane.xlu1 %310  ;;  %931 = vlog2.f32 %v405_v27  ;;  %vm338_vm13 = vcmp.gt.f32.partialorder %v308_v20, 0.0  ;;  %v416_v36 = vmul.f32 0.6931472, %v922_v29  ;;  %v478_v40 = vsel %vm240_vm0, %v462_v30, 0.0 }
  0xb8   : > { %vm339_vm14 = vcmp.gt.f32.partialorder %v311_v33, 0.0  ;;  %933 = vlog2.f32 %v406_v28  ;;  %v1153_v39 = vsel %vm338_vm13, 0.0, %v1072_v25  ;;  %479 = vadd.xlane.f32.xlu0 %v478_v40  ;;  %v484_v47 = vsel %vm240_vm0, %v464_v34, 0.0 }
  0xb9   : > { %v1157_v41 = vsel %vm339_vm14, 0.0, %v1075_v26  ;;  %v924_v42 = vpop.eup %923  ;;  %v407_v45 = vadd.f32 1e-10, %v1153_v39  ;;  %v463_v26 = vmul.f32 %v1161_v43, %v416_v36  ;;  %v465_v50 = vmul.f32 %v1148_v19, %v420_v35 }
  0xba   : > { %v408_v25 = vadd.f32 1e-10, %v1157_v41  ;;  %v926_v46 = vpop.eup %925  ;;  %v314_v49 = vpop.xlane.xlu0 %313  ;;  %v424_v51 = vmul.f32 0.6931472, %v924_v42  ;;  %v1216_v17 = vsel %vm445_vm10, %v1134_v14, 0.0  ;;  %v1227_v29 = vsel %vm445_vm10, %v1153_v39, 0.0 }
  0xbb   : > { %v317_v48 = vpop.xlane.xlu1 %316  ;;  %935 = vlog2.f32 %v407_v45  ;;  %vm340_vm1 = vcmp.gt.f32.partialorder %v314_v49, 0.0  ;;  %v422_v52 = vmul.f32 0.6931472, %v926_v46  ;;  %v481_v53 = vsel %vm240_vm0, %v463_v26, 0.0 }
  0xbc   : > { %vm341_vm15 = vcmp.gt.f32.partialorder %v317_v48, 0.0  ;;  %937 = vlog2.f32 %v408_v25  ;;  %v1177_v55 = vsel %vm340_vm1, 0.0, %v1087_v32  ;;  %485 = vadd.xlane.f32.xlu0 %v484_v47  ;;  %482 = vadd.xlane.f32.xlu1 %v481_v53  ;;  %v487_v60 = vsel %vm240_vm0, %v465_v50, 0.0 }
  0xbd   : > { %v1174_v54 = vsel %vm341_vm15, 0.0, %v1084_v31  ;;  %v928_v56 = vpop.eup %927  ;;  %v409_v31 = vadd.f32 1e-10, %v1177_v55  ;;  %v466_v61 = vmul.f32 %v1183_v57, %v422_v52  ;;  %v467_v0 = vmul.f32 %v1165_v44, %v424_v51 }
  0xbe   : > { %v410_v59 = vadd.f32 1e-10, %v1174_v54  ;;  %v930_v32 = vpop.eup %929  ;;  %v320_v63 = vpop.xlane.xlu0 %319  ;;  %v426_v1 = vmul.f32 0.6931472, %v928_v56  ;;  %vm238_vm4 = vcmp.eq.f32.partialorder %v1219_v21, inf  ;;  %v1235_v34 = vsel %vm445_vm10, %v1157_v41, 0.0 }
  0xbf   : > { %v323_v62 = vpop.xlane.xlu1 %322  ;;  %vm342_vm3 = vcmp.gt.f32.partialorder %v320_v63, 0.0  ;;  %v428_v7 = vmul.f32 0.6931472, %v930_v32  ;;  %v490_v8 = vsel %vm240_vm0, %v466_v61, 0.0  ;;  %v493_v11 = vsel %vm240_vm0, %v467_v0, 0.0 }
  0xc0   : > { %939 = vlog2.f32 %v410_v59  ;;  %vm343_vm2 = vcmp.gt.f32.partialorder %v323_v62, 0.0  ;;  %v390_v9 = vsel %vm342_vm3, 0.0, %v1099_v38  ;;  %488 = vadd.xlane.f32.xlu1 %v487_v60  ;;  %491 = vadd.xlane.f32.xlu0 %v490_v8  ;;  %v468_v15 = vmul.f32 %v1187_v58, %v426_v1 }
  0xc1   : > { %941 = vlog2.f32 %v409_v31  ;;  %v391_v3 = vsel %vm343_vm2, 0.0, %v1096_v37  ;;  %v932_v10 = vpop.eup %931  ;;  %v411_v38 = vadd.f32 1e-10, %v390_v9  ;;  %v469_v22 = vmul.f32 %v1205_v4, %v428_v7 }
  0xc2   : > { %v412_v37 = vadd.f32 1e-10, %v391_v3  ;;  %v934_v5 = vpop.eup %933  ;;  %v430_v16 = vmul.f32 0.6931472, %v932_v10  ;;  %v496_v13 = vsel %vm240_vm0, %v468_v15, 0.0  ;;  %v239_v42 = vsel %vm238_vm4, 1.0, %v973_v6 }
  0xc3   : > { %v432_v18 = vmul.f32 0.6931472, %v934_v5  ;;  %v499_v36 = vsel %vm240_vm0, %v469_v22, 0.0  ;;  %v1246_v41 = vsel %vm445_vm10, %v1174_v54, 0.0  ;;  %v1251_v48 = vsel %vm445_vm10, %v1177_v55, 0.0 }
  0xc4   : > { %943 = vlog2.f32 %v412_v37  ;;  %v470_v27 = vmul.f32 %v1210_v12, %v430_v16  ;;  %494 = vadd.xlane.f32.xlu1 %v493_v11  ;;  %497 = vadd.xlane.f32.xlu0 %v496_v13  ;;  %v241_v51 = vsel %vm240_vm0, %v239_v42, -inf  ;;  %v974_v31 = vmov 0.0|0.0  }
  0xc5   : > { %945 = vlog2.f32 %v411_v38  ;;  %v936_v28 = vpop.eup %935  ;;  %v471_v30 = vmul.f32 %v1216_v17, %v432_v18  ;;  %856 = vmatprep.subr.bf16.mxu0 %v974_v31  ;;  %v1260_v55 = vsel %vm445_vm10, %v391_v3, 0.0  ;;  %v1264_v32 = vsel %vm445_vm10, %v390_v9, 0.0 }
  0xc6   : > { %v938_v14 = vpop.eup %937  ;;  %v502_v20 = vsel %vm240_vm0, %v470_v27, 0.0  ;;  %v434_v33 = vmul.f32 0.6931472, %v936_v28 }
  0xc7   : > { %v436_v35 = vmul.f32 0.6931472, %v938_v14  ;;  %v505_v25 = vsel %vm240_vm0, %v471_v30, 0.0 }
  0xc8   : > { %v472_v39 = vmul.f32 %v1227_v29, %v434_v33  ;;  %500 = vadd.xlane.f32.xlu1 %v499_v36  ;;  %503 = vadd.xlane.f32.xlu0 %v502_v20 }
  0xc9   : > { %v473_v47 = vmul.f32 %v1235_v34, %v436_v35 }
  0xca   : > { %v940_v40 = vpop.eup %939  ;;  %v508_v46 = vsel %vm240_vm0, %v472_v39, 0.0 }
  0xcb   : > { %v942_v45 = vpop.eup %941  ;;  %v440_v26 = vmul.f32 0.6931472, %v940_v40  ;;  %v511_v53 = vsel %vm240_vm0, %v473_v47, 0.0 }
  0xcc   : > { %v438_v49 = vmul.f32 0.6931472, %v942_v45  ;;  %506 = vadd.xlane.f32.xlu1 %v505_v25  ;;  %509 = vadd.xlane.f32.xlu0 %v508_v46 }
  0xcd   : > { %v475_v59 = vmul.f32 %v1246_v41, %v440_v26 }
  0xce   : > { %v944_v50 = vpop.eup %943  ;;  %v474_v56 = vmul.f32 %v1251_v48, %v438_v49 }
  0xcf   : > { %v946_v52 = vpop.eup %945  ;;  %v444_v54 = vmul.f32 0.6931472, %v944_v50  ;;  %v517_v62 = vsel %vm240_vm0, %v475_v59, 0.0 }
  0xd0   : > { %v442_v60 = vmul.f32 0.6931472, %v946_v52  ;;  %512 = vadd.xlane.f32.xlu1 %v511_v53  ;;  %242 = vmax.xlane.f32.xlu0 %v241_v51  ;;  %v514_v61 = vsel %vm240_vm0, %v474_v56, 0.0 }
  0xd1   : > { %v477_v0 = vmul.f32 %v1260_v55, %v444_v54 }
  0xd2   : > { %v476_v63 = vmul.f32 %v1264_v32, %v442_v60 }
  0xd3   : > { %v523_v7 = vsel %vm240_vm0, %v477_v0, 0.0 }
  0xd4   : > { %515 = vadd.xlane.f32.xlu1 %v514_v61  ;;  %518 = vadd.xlane.f32.xlu0 %v517_v62  ;;  %v520_v1 = vsel %vm240_vm0, %v476_v63, 0.0 }
  0xd8   : > { %521 = vadd.xlane.f32.xlu1 %v520_v1  ;;  %524 = vadd.xlane.f32.xlu0 %v523_v7 }
 0x145   : > { %v480_v8 = vpop.xlane.xlu0 %479 }
 0x146   : > { %v529_v9 = vsel %vm526_vm6, %v480_v8, %v1142_v24 }
 0x149   : > { %v483_v3 = vpop.xlane.xlu1 %482  ;;  %v486_v6 = vpop.xlane.xlu0 %485 }
 0x14a   : > { %v530_v10 = vsel %vm526_vm6, %v483_v3, %v1161_v43  ;;  %v531_v43 = vsel %vm526_vm6, %v486_v6, %v1138_v23 }
 0x14b   : > { %v857_v38 = vpack.c.bf16 %v530_v10, %v529_v9 }
 0x14d   : > { %v489_v5 = vpop.xlane.xlu1 %488  ;;  %859 = vmatpush3.bf16.xpose.msk.msra.mxu0 %vm1282_vm7, %v857_v38  ;;  %v492_v16 = vpop.xlane.xlu0 %491 }
 0x14e   : > { %860 = vmatprep.subr.bf16.mxu0 %v974_v31  ;;  %v532_v24 = vsel %vm526_vm6, %v489_v5, %v1148_v19  ;;  %v533_v19 = vsel %vm526_vm6, %v492_v16, %v1183_v57 }
 0x14f   : > { %v861_v15 = vpack.c.bf16 %v532_v24, %v531_v43 }
 0x151   : > { %v495_v11 = vpop.xlane.xlu1 %494  ;;  %v498_v13 = vpop.xlane.xlu0 %497 }
 0x152   : > { %v534_v18 = vsel %vm526_vm6, %v495_v11, %v1165_v44  ;;  %v535_v44 = vsel %vm526_vm6, %v498_v13, %v1187_v58 }
 0x153   : > { %v865_v22 = vpack.c.bf16 %v534_v18, %v533_v19 }
 0x155   : > { %863 = vmatpush3.bf16.xpose.msk.msra.mxu0 %vm1282_vm7, %v861_v15  ;;  %v501_v27 = vpop.xlane.xlu1 %500  ;;  %v504_v23 = vpop.xlane.xlu0 %503 }
 0x156   : > { %864 = vmatprep.subr.bf16.mxu0 %v974_v31  ;;  %v536_v28 = vsel %vm526_vm6, %v501_v27, %v1205_v4  ;;  %v537_v4 = vsel %vm526_vm6, %v504_v23, %v1210_v12 }
 0x157   : > { %v869_v14 = vpack.c.bf16 %v536_v28, %v535_v44 }
 0x159   : > { %v507_v20 = vpop.xlane.xlu1 %506  ;;  %v510_v30 = vpop.xlane.xlu0 %509 }
 0x15a   : > { %v538_v57 = vsel %vm526_vm6, %v507_v20, %v1216_v17  ;;  %v539_v17 = vsel %vm526_vm6, %v510_v30, %v1227_v29 }
 0x15b   : > { %v873_v33 = vpack.c.bf16 %v538_v57, %v537_v4 }
 0x15d   : > { %867 = vmatpush3.bf16.xpose.msk.msra.mxu0 %vm1282_vm7, %v865_v22  ;;  %v243_v35 = vpop.xlane.xlu0 %242  ;;  %v513_v58 = vpop.xlane.xlu1 %512 }
 0x15e   : > { %868 = vmatprep.subr.bf16.mxu0 %v974_v31  ;;  %vm324_vm8 = vcmp.gt.f32.partialorder %v243_v35, 0.0  ;;  %v540_v39 = vsel %vm526_vm6, %v513_v58, %v1235_v34  ;;  %v666_v52 = vsub.f32 1.0, %v243_v35 }
 0x15f   : > { %v327_v36 = vsel %vm324_vm8, 0.0, %v1219_v21  ;;  %v877_v40 = vpack.c.bf16 %v540_v39, %v539_v17 }
 0x160   : > { %v394_v12 = vadd.f32 1e-10, %v327_v36  ;;  %v667_v53 = vmul.f32 0.26666668, %v666_v52 }
 0x161   : > { %v516_v42 = vpop.xlane.xlu1 %515  ;;  %v519_v45 = vpop.xlane.xlu0 %518 }
 0x162   : > { %947 = vlog2.f32 %v394_v12  ;;  %v541_v21 = vsel %vm526_vm6, %v516_v42, %v1251_v48  ;;  %v542_v34 = vsel %vm526_vm6, %v519_v45, %v1246_v41 }
 0x163   : > { %v881_v25 = vpack.c.bf16 %v542_v34, %v541_v21 }
 0x165   : > { %871 = vmatpush3.bf16.xpose.msk.msra.mxu0 %vm1282_vm7, %v869_v14  ;;  %v522_v29 = vpop.xlane.xlu1 %521  ;;  %v525_v46 = vpop.xlane.xlu0 %524 }
 0x166   : > { %872 = vmatprep.subr.bf16.mxu0 %v974_v31  ;;  %v543_v26 = vsel %vm526_vm6, %v522_v29, %v1264_v32  ;;  %v544_v48 = vsel %vm526_vm6, %v525_v46, %v1260_v55 }
 0x167   : > { %v885_v49 = vpack.c.bf16 %v544_v48, %v543_v26 }
 0x16c   : > { %v948_v47 = vpop.eup %947 }
 0x16d   : > { %875 = vmatpush3.bf16.xpose.msk.msra.mxu0 %vm1282_vm7, %v873_v33  ;;  %v396_v41 = vmul.f32 0.6931472, %v948_v47 }
 0x16e   : > { %876 = vmatprep.subr.bf16.mxu0 %v974_v31 }
 0x16f   : > { %v527_v50 = vsub.f32 0.0, %v396_v41 }
 0x171   : > { %v528_v51 = vsel %vm526_vm6, 1.0, %v527_v50 }
 0x175   : > { %879 = vmatpush3.bf16.xpose.msk.msra.mxu0 %vm1282_vm7, %v877_v40 }
 0x176   : > { %880 = vmatprep.subr.bf16.mxu0 %v974_v31 }
 0x17d   : > { %883 = vmatpush3.bf16.xpose.msk.msra.mxu0 %vm1282_vm7, %v881_v25 }
 0x17e   : > { %884 = vmatprep.subr.bf16.mxu0 %v974_v31 }
 0x185   : > { %887 = vmatpush3.bf16.xpose.msk.msra.mxu0 %vm1282_vm7, %v885_v49 }
 0x18c   : > { %854 = vmatmul.mubr.msk.f32.vlgmr.msra.gmra.mrb[0].mxu0 %vm240_vm0, %v528_v51 }
 0x25f   : > { %v662_v56 = vpop.f32.mrb[0].mxu0 }
 0x260   : > { %v668_v59 = vmul.f32 %v667_v53, %v662_v56  ;;  %v855_v54 = vpop.f32.mrb[1].mxu0 }
 0x262   : > { %669 = vst [vmem:[%s220_s23] sm:$0xff] %v668_v59 }
 0x263 PF: > { %s12_s11 = sadd.s32 1, %s971_s11   ;;  %s1374_s9 = smov %s967_s10 }
 0x264   : > { %p9_p5 = scmp.ge.s32.totalorder %s12_s11, 4   ;;  %s1375_s10 = smov %s1377_s12 }
 0x266   :  { %11 = sbr.rel (!%p9_p5) target bundleno = 2 (0x2), region = 61 }

</bundles_post_ra>
